<compile_context>
chip_gen: v7x
topology: tpu7x:2x2x1
jax: 0.10.0
libtpu: 0.0.40
codegen_flags: <defaults>
</compile_context>

<pallas_src>
import functools

import jax
import jax.numpy as jnp
from jax.experimental import pallas as pl
from jax.experimental.pallas import tpu as pltpu

LANES = 128        # batch elements per lane row
_ROW_CHUNK = 512   # rows processed per in-kernel loop step (bounds code size)


def _round_up(n, m):
    return ((n + m - 1) // m) * m


def _sigmoid_f32(z):
    # sigmoid(z) = 0.5 * tanh(0.5 * z) + 0.5  -> single EUP push per element.
    return 0.5 * jnp.tanh(0.5 * z) + 0.5


def _updater_kernel(x0_ref, x1_ref, w1_ref, b1_ref, w2_ref, b2_ref, o_ref, *,
                    row_chunk):
    # x0_ref, x1_ref : VMEM (TR, 128)  feature planes, batch on lanes
    # w1_ref : SMEM (8,)  flat (in, out): w1[i*4 + j] = W1[i, j]
    # b1_ref : SMEM (4,) ; w2_ref : SMEM (4,) ; b2_ref : SMEM (1,)
    # o_ref  : VMEM (TR, 128)  lane-dense output
    #
    # Hoist all SMEM scalar reads once (avoid repeated sld + broadcast per use).
    w1 = [w1_ref[i] for i in range(8)]
    b1 = [b1_ref[j] for j in range(4)]
    w2 = [w2_ref[j] for j in range(4)]
    b2 = b2_ref[0]

    def do_rows(r0):
        x0 = x0_ref[pl.ds(r0, row_chunk), :].astype(jnp.float32)
        x1 = x1_ref[pl.ds(r0, row_chunk), :].astype(jnp.float32)
        acc = b2  # fold the output bias into the accumulator start
        for j in range(4):  # 4 hidden units, fully unrolled: pure VPU + EUP
            z = x0 * w1[j] + x1 * w1[4 + j] + b1[j]
            acc = acc + _sigmoid_f32(z) * w2[j]
        o_ref[pl.ds(r0, row_chunk), :] = _sigmoid_f32(acc).astype(o_ref.dtype)

    n_chunks = x0_ref.shape[0] // row_chunk
    if n_chunks == 1:
        do_rows(0)
    else:
        def body(c, carry):
            do_rows(pl.multiple_of(c * row_chunk, row_chunk))
            return carry
        jax.lax.fori_loop(0, n_chunks, body, 0)


@functools.partial(jax.jit, static_argnames=("block_rows",))
def updater_forward_planes(x0, x1, w1, b1, w2, b2, *, block_rows=4096):
    """Zero-extra-pass entry: x0, x1 are the two feature columns, shape (B,).

    w1: (2, 4) stored (in, out) (i.e. torch `fc1.weight.T`), b1: (4,),
    w2: (4, 1) (torch `fc2.weight.T`), b2: (1,).  Returns (B, 1) in x0.dtype.
    """
    B = x0.shape[0]
    out_dtype = x0.dtype
    sub = 16 if out_dtype == jnp.bfloat16 else 8  # (16,128) tiling for bf16 I/O

    rows = _round_up(pl.cdiv(B, LANES), sub)
    Bp = rows * LANES
    if Bp != B:
        # Only lane-unaligned batches pay this small pad copy; aligned batches
        # take the zero-copy reshape below.
        x0 = jnp.pad(x0, (0, Bp - B))
        x1 = jnp.pad(x1, (0, Bp - B))
    x0_2d = x0.reshape(rows, LANES)   # free, row-major
    x1_2d = x1.reshape(rows, LANES)

    # --- tile size selection -------------------------------------------------
    br = max(sub, (int(block_rows) // sub) * sub)     # round user value to sublane tile
    tr = min(br, rows)
    if rows >= 2 * 2048:
        # v7x megacore: guarantee >= 2 parallel grid steps, but never shrink a
        # step below 2048 rows (per-step pipeline overhead).
        tr = min(tr, max(2048, _round_up(pl.cdiv(rows, 2), sub)))
    if tr > _ROW_CHUNK:
        tr = (tr // _ROW_CHUNK) * _ROW_CHUNK          # multiple of in-kernel chunk
    row_chunk = min(_ROW_CHUNK, tr)
    n_blocks = pl.cdiv(rows, tr)

    # --- scalar params into SMEM ----------------------------------------------
    w1f = jnp.asarray(w1, jnp.float32).reshape(8)
    b1f = jnp.asarray(b1, jnp.float32).reshape(4)
    w2f = jnp.asarray(w2, jnp.float32).reshape(4)
    b2f = jnp.asarray(b2, jnp.float32).reshape(1)
    smem = pl.BlockSpec(memory_space=pltpu.MemorySpace.SMEM)

    out = pl.pallas_call(
        functools.partial(_updater_kernel, row_chunk=row_chunk),
        out_shape=jax.ShapeDtypeStruct((rows, LANES), out_dtype),
        grid=(n_blocks,),
        in_specs=[
            pl.BlockSpec((tr, LANES), lambda i: (i, 0)),   # x0 plane
            pl.BlockSpec((tr, LANES), lambda i: (i, 0)),   # x1 plane
            smem, smem, smem, smem,                        # w1, b1, w2, b2
        ],
        out_specs=pl.BlockSpec((tr, LANES), lambda i: (i, 0)),  # lane-dense out
        compiler_params=pltpu.CompilerParams(
            dimension_semantics=("parallel",),             # 2 TCs on v7x
        ),
    )(x0_2d, x1_2d, w1f, b1f, w2f, b2f)

    y = out.reshape(-1)
    if Bp != B:
        y = y[:B]
    return y.reshape(B, 1)


@functools.partial(jax.jit, static_argnames=("block_rows",))
def updater_forward(x, w1, b1, w2, b2, *, block_rows=4096):
    """Module-compatible entry: x is (B, 2) row-major, like the torch module.

    Splitting x into its two feature planes costs one fused XLA pass over x
    (it fuses into x's producer inside a larger program).  Callers that can
    hand over the feature columns directly should use `updater_forward_planes`
    to run at the kernel's 12 B/elem HBM roofline.
    """
    return updater_forward_planes(x[:, 0], x[:, 1], w1, b1, w2, b2,
                                  block_rows=block_rows)


def init_params(key):
    """torch.nn.Linear-style init: U(-1/sqrt(fan_in), 1/sqrt(fan_in)).
    Weights stored as (in, out) == torch weight.T."""
    k1, k2, k3, k4 = jax.random.split(key, 4)
    lim1 = 1.0 / jnp.sqrt(2.0)   # fc1: in_features = 2
    lim2 = 1.0 / jnp.sqrt(4.0)   # fc2: in_features = 4
    w1 = jax.random.uniform(k1, (2, 4), jnp.float32, -lim1, lim1)
    b1 = jax.random.uniform(k2, (4,), jnp.float32, -lim1, lim1)
    w2 = jax.random.uniform(k3, (4, 1), jnp.float32, -lim2, lim2)
    b2 = jax.random.uniform(k4, (1,), jnp.float32, -lim2, lim2)
    return w1, b1, w2, b2


def reference_forward(x, w1, b1, w2, b2):
    h = jax.nn.sigmoid(x @ w1 + b1)
    return jax.nn.sigmoid(h @ w2 + b2)


if __name__ == "__main__":
    key = jax.random.PRNGKey(0)
    kx, kp = jax.random.split(key)
    w1, b1, w2, b2 = init_params(kp)

    # 1) module-contract path, lane-aligned batch
    B = 1024
    x = jax.random.normal(kx, (B, 2), dtype=jnp.float32)
    out = jax.block_until_ready(updater_forward(x, w1, b1, w2, b2))
    ref = reference_forward(x, w1, b1, w2, b2)
    assert out.shape == (B, 1), out.shape
    assert jnp.allclose(out, ref, atol=1e-5, rtol=1e-5)

    # 2) SoA "planes" entry (the zero-extra-pass contract)
    out_p = jax.block_until_ready(
        updater_forward_planes(x[:, 0], x[:, 1], w1, b1, w2, b2))
    assert jnp.allclose(out_p, ref, atol=1e-5, rtol=1e-5)

    # 3) lane-unaligned batch (exercises the padded-tail path)
    Bt = 200
    xt = jax.random.normal(jax.random.PRNGKey(1), (Bt, 2), dtype=jnp.float32)
    out_t = jax.block_until_ready(updater_forward(xt, w1, b1, w2, b2))
    assert out_t.shape == (Bt, 1)
    assert jnp.allclose(out_t, reference_forward(xt, w1, b1, w2, b2),
                        atol=1e-5, rtol=1e-5)

    # 4) multi-step grid (small tile forces >1 pipelined block)
    Bg = 4096
    xg = jax.random.normal(jax.random.PRNGKey(2), (Bg, 2), dtype=jnp.float32)
    out_g = jax.block_until_ready(updater_forward(xg, w1, b1, w2, b2, block_rows=8))
    assert jnp.allclose(out_g, reference_forward(xg, w1, b1, w2, b2),
                        atol=1e-5, rtol=1e-5)

    # 5) bf16 I/O option (v5e/v6e feedback): I/O in bf16, math in f32
    xb = x.astype(jnp.bfloat16)
    out_b = jax.block_until_ready(updater_forward(xb, w1, b1, w2, b2))
    ref_b = reference_forward(xb.astype(jnp.float32), w1, b1, w2, b2)
    assert out_b.dtype == jnp.bfloat16
    assert jnp.allclose(out_b.astype(jnp.float32), ref_b, atol=3e-2, rtol=3e-2)

    print("KERNEL_OK")
</pallas_src>

<mosaic_0001>
module attributes {stable_mosaic.version = 11 : i64} {
  func.func @_updater_kernel(%arg0: i32, %arg1: memref<8x128xf32, #tpu.memory_space<vmem>>, %arg2: memref<8x128xf32, #tpu.memory_space<vmem>>, %arg3: memref<8xf32, #tpu.memory_space<smem>>, %arg4: memref<4xf32, #tpu.memory_space<smem>>, %arg5: memref<4xf32, #tpu.memory_space<smem>>, %arg6: memref<1xf32, #tpu.memory_space<smem>>, %arg7: memref<8x128xf32, #tpu.memory_space<vmem>>) attributes {dimension_semantics = [#tpu.dimension_semantics<parallel>], iteration_bounds = array<i64: 1>, scalar_prefetch = 0 : i64, scratch_operands = 0 : i64, tpu.core_type = #tpu.core_type<tc>, window_params = [{transform_indices = @transform_0, window_bounds = array<i64: 8, 128>}, {transform_indices = @transform_1, window_bounds = array<i64: 8, 128>}, {transform_indices = @transform_2, window_bounds = array<i64: 8>}, {transform_indices = @transform_3, window_bounds = array<i64: 4>}, {transform_indices = @transform_4, window_bounds = array<i64: 4>}, {transform_indices = @transform_5, window_bounds = array<i64: 1>}, {transform_indices = @transform_6, window_bounds = array<i64: 8, 128>}]} {
    %c0 = arith.constant 0 : index
    %0 = memref.load %arg3[%c0] : memref<8xf32, #tpu.memory_space<smem>>
    %c1 = arith.constant 1 : index
    %1 = memref.load %arg3[%c1] : memref<8xf32, #tpu.memory_space<smem>>
    %c2 = arith.constant 2 : index
    %2 = memref.load %arg3[%c2] : memref<8xf32, #tpu.memory_space<smem>>
    %c3 = arith.constant 3 : index
    %3 = memref.load %arg3[%c3] : memref<8xf32, #tpu.memory_space<smem>>
    %c4 = arith.constant 4 : index
    %4 = memref.load %arg3[%c4] : memref<8xf32, #tpu.memory_space<smem>>
    %c5 = arith.constant 5 : index
    %5 = memref.load %arg3[%c5] : memref<8xf32, #tpu.memory_space<smem>>
    %c6 = arith.constant 6 : index
    %6 = memref.load %arg3[%c6] : memref<8xf32, #tpu.memory_space<smem>>
    %c7 = arith.constant 7 : index
    %7 = memref.load %arg3[%c7] : memref<8xf32, #tpu.memory_space<smem>>
    %c0_0 = arith.constant 0 : index
    %8 = memref.load %arg4[%c0_0] : memref<4xf32, #tpu.memory_space<smem>>
    %c1_1 = arith.constant 1 : index
    %9 = memref.load %arg4[%c1_1] : memref<4xf32, #tpu.memory_space<smem>>
    %c2_2 = arith.constant 2 : index
    %10 = memref.load %arg4[%c2_2] : memref<4xf32, #tpu.memory_space<smem>>
    %c3_3 = arith.constant 3 : index
    %11 = memref.load %arg4[%c3_3] : memref<4xf32, #tpu.memory_space<smem>>
    %c0_4 = arith.constant 0 : index
    %12 = memref.load %arg5[%c0_4] : memref<4xf32, #tpu.memory_space<smem>>
    %c1_5 = arith.constant 1 : index
    %13 = memref.load %arg5[%c1_5] : memref<4xf32, #tpu.memory_space<smem>>
    %c2_6 = arith.constant 2 : index
    %14 = memref.load %arg5[%c2_6] : memref<4xf32, #tpu.memory_space<smem>>
    %c3_7 = arith.constant 3 : index
    %15 = memref.load %arg5[%c3_7] : memref<4xf32, #tpu.memory_space<smem>>
    %c0_8 = arith.constant 0 : index
    %16 = memref.load %arg6[%c0_8] : memref<1xf32, #tpu.memory_space<smem>>
    %c0_9 = arith.constant 0 : index
    %c0_10 = arith.constant 0 : index
    %17 = vector.load %arg1[%c0_9, %c0_10] : memref<8x128xf32, #tpu.memory_space<vmem>>, vector<8x128xf32>
    %c0_11 = arith.constant 0 : index
    %c0_12 = arith.constant 0 : index
    %18 = vector.load %arg2[%c0_11, %c0_12] : memref<8x128xf32, #tpu.memory_space<vmem>>, vector<8x128xf32>
    %19 = vector.broadcast %0 : f32 to vector<8x128xf32>
    %20 = arith.mulf %17, %19 : vector<8x128xf32>
    %21 = vector.broadcast %4 : f32 to vector<8x128xf32>
    %22 = arith.mulf %18, %21 : vector<8x128xf32>
    %23 = arith.addf %20, %22 : vector<8x128xf32>
    %24 = vector.broadcast %8 : f32 to vector<8x128xf32>
    %25 = arith.addf %23, %24 : vector<8x128xf32>
    %cst = arith.constant 5.000000e-01 : f32
    %26 = vector.broadcast %cst : f32 to vector<8x128xf32>
    %27 = arith.mulf %26, %25 : vector<8x128xf32>
    %28 = math.tanh %27 : vector<8x128xf32>
    %cst_13 = arith.constant 5.000000e-01 : f32
    %29 = vector.broadcast %cst_13 : f32 to vector<8x128xf32>
    %30 = arith.mulf %29, %28 : vector<8x128xf32>
    %cst_14 = arith.constant 5.000000e-01 : f32
    %31 = vector.broadcast %cst_14 : f32 to vector<8x128xf32>
    %32 = arith.addf %30, %31 : vector<8x128xf32>
    %33 = vector.broadcast %12 : f32 to vector<8x128xf32>
    %34 = arith.mulf %32, %33 : vector<8x128xf32>
    %35 = vector.broadcast %16 : f32 to vector<8x128xf32>
    %36 = arith.addf %35, %34 : vector<8x128xf32>
    %37 = vector.broadcast %1 : f32 to vector<8x128xf32>
    %38 = arith.mulf %17, %37 : vector<8x128xf32>
    %39 = vector.broadcast %5 : f32 to vector<8x128xf32>
    %40 = arith.mulf %18, %39 : vector<8x128xf32>
    %41 = arith.addf %38, %40 : vector<8x128xf32>
    %42 = vector.broadcast %9 : f32 to vector<8x128xf32>
    %43 = arith.addf %41, %42 : vector<8x128xf32>
    %cst_15 = arith.constant 5.000000e-01 : f32
    %44 = vector.broadcast %cst_15 : f32 to vector<8x128xf32>
    %45 = arith.mulf %44, %43 : vector<8x128xf32>
    %46 = math.tanh %45 : vector<8x128xf32>
    %cst_16 = arith.constant 5.000000e-01 : f32
    %47 = vector.broadcast %cst_16 : f32 to vector<8x128xf32>
    %48 = arith.mulf %47, %46 : vector<8x128xf32>
    %cst_17 = arith.constant 5.000000e-01 : f32
    %49 = vector.broadcast %cst_17 : f32 to vector<8x128xf32>
    %50 = arith.addf %48, %49 : vector<8x128xf32>
    %51 = vector.broadcast %13 : f32 to vector<8x128xf32>
    %52 = arith.mulf %50, %51 : vector<8x128xf32>
    %53 = arith.addf %36, %52 : vector<8x128xf32>
    %54 = vector.broadcast %2 : f32 to vector<8x128xf32>
    %55 = arith.mulf %17, %54 : vector<8x128xf32>
    %56 = vector.broadcast %6 : f32 to vector<8x128xf32>
    %57 = arith.mulf %18, %56 : vector<8x128xf32>
    %58 = arith.addf %55, %57 : vector<8x128xf32>
    %59 = vector.broadcast %10 : f32 to vector<8x128xf32>
    %60 = arith.addf %58, %59 : vector<8x128xf32>
    %cst_18 = arith.constant 5.000000e-01 : f32
    %61 = vector.broadcast %cst_18 : f32 to vector<8x128xf32>
    %62 = arith.mulf %61, %60 : vector<8x128xf32>
    %63 = math.tanh %62 : vector<8x128xf32>
    %cst_19 = arith.constant 5.000000e-01 : f32
    %64 = vector.broadcast %cst_19 : f32 to vector<8x128xf32>
    %65 = arith.mulf %64, %63 : vector<8x128xf32>
    %cst_20 = arith.constant 5.000000e-01 : f32
    %66 = vector.broadcast %cst_20 : f32 to vector<8x128xf32>
    %67 = arith.addf %65, %66 : vector<8x128xf32>
    %68 = vector.broadcast %14 : f32 to vector<8x128xf32>
    %69 = arith.mulf %67, %68 : vector<8x128xf32>
    %70 = arith.addf %53, %69 : vector<8x128xf32>
    %71 = vector.broadcast %3 : f32 to vector<8x128xf32>
    %72 = arith.mulf %17, %71 : vector<8x128xf32>
    %73 = vector.broadcast %7 : f32 to vector<8x128xf32>
    %74 = arith.mulf %18, %73 : vector<8x128xf32>
    %75 = arith.addf %72, %74 : vector<8x128xf32>
    %76 = vector.broadcast %11 : f32 to vector<8x128xf32>
    %77 = arith.addf %75, %76 : vector<8x128xf32>
    %cst_21 = arith.constant 5.000000e-01 : f32
    %78 = vector.broadcast %cst_21 : f32 to vector<8x128xf32>
    %79 = arith.mulf %78, %77 : vector<8x128xf32>
    %80 = math.tanh %79 : vector<8x128xf32>
    %cst_22 = arith.constant 5.000000e-01 : f32
    %81 = vector.broadcast %cst_22 : f32 to vector<8x128xf32>
    %82 = arith.mulf %81, %80 : vector<8x128xf32>
    %cst_23 = arith.constant 5.000000e-01 : f32
    %83 = vector.broadcast %cst_23 : f32 to vector<8x128xf32>
    %84 = arith.addf %82, %83 : vector<8x128xf32>
    %85 = vector.broadcast %15 : f32 to vector<8x128xf32>
    %86 = arith.mulf %84, %85 : vector<8x128xf32>
    %87 = arith.addf %70, %86 : vector<8x128xf32>
    %cst_24 = arith.constant 5.000000e-01 : f32
    %88 = vector.broadcast %cst_24 : f32 to vector<8x128xf32>
    %89 = arith.mulf %88, %87 : vector<8x128xf32>
    %90 = math.tanh %89 : vector<8x128xf32>
    %cst_25 = arith.constant 5.000000e-01 : f32
    %91 = vector.broadcast %cst_25 : f32 to vector<8x128xf32>
    %92 = arith.mulf %91, %90 : vector<8x128xf32>
    %cst_26 = arith.constant 5.000000e-01 : f32
    %93 = vector.broadcast %cst_26 : f32 to vector<8x128xf32>
    %94 = arith.addf %92, %93 : vector<8x128xf32>
    %c0_27 = arith.constant 0 : index
    %c0_28 = arith.constant 0 : index
    %95 = vector.load %arg7[%c0_27, %c0_28] : memref<8x128xf32, #tpu.memory_space<vmem>>, vector<8x128xf32>
    tpu.vector_store %arg7[%c0_27, %c0_28], %94 {strides = array<i32>} : memref<8x128xf32, #tpu.memory_space<vmem>>, vector<8x128xf32>,
    return
  }
  func.func @transform_0(%arg0: i32) -> (i32, i32) {
    %c0_i32 = arith.constant 0 : i32
    %c0_i32_0 = arith.constant 0 : i32
    return %arg0, %c0_i32 : i32, i32
  }
  func.func @transform_1(%arg0: i32) -> (i32, i32) {
    %c0_i32 = arith.constant 0 : i32
    %c0_i32_0 = arith.constant 0 : i32
    return %arg0, %c0_i32 : i32, i32
  }
  func.func @transform_2(%arg0: i32) -> i32 {
    %c0_i32 = arith.constant 0 : i32
    %c0_i32_0 = arith.constant 0 : i32
    return %c0_i32 : i32
  }
  func.func @transform_3(%arg0: i32) -> i32 {
    %c0_i32 = arith.constant 0 : i32
    %c0_i32_0 = arith.constant 0 : i32
    return %c0_i32 : i32
  }
  func.func @transform_4(%arg0: i32) -> i32 {
    %c0_i32 = arith.constant 0 : i32
    %c0_i32_0 = arith.constant 0 : i32
    return %c0_i32 : i32
  }
  func.func @transform_5(%arg0: i32) -> i32 {
    %c0_i32 = arith.constant 0 : i32
    %c0_i32_0 = arith.constant 0 : i32
    return %c0_i32 : i32
  }
  func.func @transform_6(%arg0: i32) -> (i32, i32) {
    %c0_i32 = arith.constant 0 : i32
    %c0_i32_0 = arith.constant 0 : i32
    return %arg0, %c0_i32 : i32, i32
  }
}

</mosaic_0001>

<bundles_post_ra>
// kernel: updater_forward_planes.1
= control target key start
LH: loop header
LB: loop body
LE: loop exit
PB: predicated region body
PF: predicated region fallthrough
CT: control target
= control target key end

     0   :  { %12 = vsyncpa [#allocation5], 0  ;;  %s318_s0 = inlined_call_operand.vmem [shape: f32[8,128], index: 0, kind: input, shape index: {}]   ;;  %s319_s1 = inlined_call_operand.vmem [shape: f32[8,128], index: 1, kind: input, shape index: {}]   ;;  %s320_s2 = inlined_call_operand.vmem [shape: f32[8], index: 2, kind: input, shape index: {}]   ;;  %s321_s3 = inlined_call_operand.vmem [shape: f32[4], index: 3, kind: input, shape index: {}]   ;;  %s322_s4 = inlined_call_operand.vmem [shape: f32[4], index: 4, kind: input, shape index: {}]   ;;  %s323_s5 = inlined_call_operand.<no memory space> [shape: f32[1], index: 5, kind: input, shape index: {}]   ;;  %s324_s6 = inlined_call_operand.hbm [shape: f32[8,128], index: 6, kind: output, shape index: {}]  }
   0x1   :  { %13 = vsyncpa [#allocation7], 0  ;;  %s35_s23 = sshll.u32 %s321_s3, 4  ;;  %s36_s23 = int_to_ptr.vmem [resolvable:$true] %s35_s23 }
   0x2   :  { %14 = vsyncpa [#allocation4], 0  ;;  %s25_s26 = sshll.u32 %s320_s2, 4  ;;  %s185_s27 = scalar_lea.vmem %s36_s23, 16  ;;  %s26_s26 = int_to_ptr.vmem [resolvable:$true] %s25_s26 }
   0x3   :  { %p186_p0 = scmp.ne.s32.totalorder %s36_s23, %s185_s27  ;;  %p190_p1 = scmp.lt.s32.totalorder %s36_s23, %s36_s23 }
   0x4   :  { %p191_p2 = scmp.lt.s32.totalorder %s185_s27, %s185_s27 }
   0x6   :  { %p192_p3 = por %p191_p2, %p190_p1 }
   0x8   :  { %p193_p4 = pnand %p192_p3, %p186_p0 }
   0xa   :  { %196 = shalt.err (!%p193_p4)
}
   0xb   :  { %s249_s28 = smov [#allocation6]   ;;  %s197_s29 = scalar_lea.vmem %s26_s26, 16 }
   0xc   :  { %38 = dma.vmem_to_smem %s36_s23, 16, %s249_s28, [#allocation7]  }
   0xd   :  { %p198_p5 = scmp.ne.s32.totalorder %s26_s26, %s197_s29  ;;  %p202_p6 = scmp.lt.s32.totalorder %s26_s26, %s26_s26 }
   0xe   :  { %p203_p7 = scmp.lt.s32.totalorder %s197_s29, %s197_s29 }
  0x10   :  { %p204_p8 = por %p203_p7, %p202_p6 }
  0x12   :  { %p205_p9 = pnand %p204_p8, %p198_p5 }
  0x14   :  { %208 = shalt.err (!%p205_p9)
}
  0x15   :  { %s250_s3 = smov [#allocation3]   ;;  %s45_s7 = sshll.u32 %s322_s4, 4  ;;  %s46_s7 = int_to_ptr.vmem [resolvable:$true] %s45_s7 }
  0x16   :  { %28 = dma.vmem_to_smem %s26_s26, 16, %s250_s3, [#allocation5]  }
  0x17   :  { %s209_s8 = scalar_lea.vmem %s46_s7, 16  ;;  %p214_p11 = scmp.lt.s32.totalorder %s46_s7, %s46_s7 }
  0x18   :  { %p210_p10 = scmp.ne.s32.totalorder %s46_s7, %s209_s8  ;;  %p215_p12 = scmp.lt.s32.totalorder %s209_s8, %s209_s8 }
  0x1a   :  { %p216_p13 = por %p215_p12, %p214_p11 }
  0x1c   :  { %p217_p0 = pnand %p216_p13, %p210_p10 }
  0x1e   :  { %220 = shalt.err (!%p217_p0)
}
  0x1f   :  { %s251_s9 = smov [#allocation8]  }
  0x20   :  { %48 = dma.vmem_to_smem %s46_s7, 16, %s251_s9, [#allocation7]  }
  0x21   :  { %243 = dma.done.wait [#allocation5], 16  }
  0x22   :  { %244 = vsyncadd [#allocation5], 4294967280 }
  0x23   :  { %245 = dma.done.wait [#allocation7], 32  }
  0x24   :  { %246 = vsyncadd [#allocation7], 4294967264 }
  0x25   :  { %60 = sfence }
  0x26   :  { %s61_s10 = sld [smem:[#allocation3]]  ;;  %s158_s11 = sld [smem:[#allocation3 + $0x1]]  ;;  %v78_v0 = vld [vmem:[%s318_s0] sm:$0xff]  ;;  %v93_v44 = vstv %s323_s5 }
  0x27   :  { %s159_s12 = sld [smem:[#allocation3 + $0x2]]  ;;  %s160_s13 = sld [smem:[#allocation3 + $0x3]]  ;;  %v79_v1 = vld [vmem:[%s319_s1] sm:$0xff] }
  0x28   :  { %s161_s4 = sld [smem:[#allocation3 + $0x4]]  ;;  %s162_s14 = sld [smem:[#allocation3 + $0x5]] }
  0x29   :  { %s163_s15 = sld [smem:[#allocation3 + $0x6]]  ;;  %s164_s16 = sld [smem:[#allocation3 + $0x7]] }
  0x2a   :  { %s69_s17 = sld [smem:[#allocation6]]  ;;  %s165_s18 = sld [smem:[#allocation6 + $0x1]] }
  0x2b   :  { %s166_s21 = sld [smem:[#allocation6 + $0x2]]  ;;  %s167_s22 = sld [smem:[#allocation6 + $0x3]] }
  0x2c   :  { %v80_v2 = vstv %s61_s10  ;;  %v95_v3 = vstv %s158_s11  ;;  %s73_s0 = sld [smem:[#allocation8]]  ;;  %s168_s1 = sld [smem:[#allocation8 + $0x1]] }
  0x2d   :  { %v81_v4 = vmul.f32 %v80_v2, %v78_v0  ;;  %v96_v5 = vmul.f32 %v95_v3, %v78_v0  ;;  %v109_v6 = vstv %s159_s12  ;;  %v123_v7 = vstv %s160_s13  ;;  %s169_s25 = sld [smem:[#allocation8 + $0x2]]  ;;  %s170_s26 = sld [smem:[#allocation8 + $0x3]] }
  0x2e   :  { %v82_v8 = vstv %s161_s4  ;;  %v97_v9 = vstv %s162_s14  ;;  %v110_v10 = vmul.f32 %v109_v6, %v78_v0  ;;  %v124_v11 = vmul.f32 %v123_v7, %v78_v0  ;;  %s252_s29 = smov [#allocation9]  }
  0x2f   :  { %v83_v12 = vmul.f32 %v82_v8, %v79_v1  ;;  %v98_v13 = vmul.f32 %v97_v9, %v79_v1  ;;  %v111_v14 = vstv %s163_s15  ;;  %v125_v15 = vstv %s164_s16  ;;  %s148_s3 = sshll.u32 %s252_s29, 4  ;;  %s149_s3 = int_to_ptr.vmem [resolvable:$true] %s148_s3 }
  0x30   :  { %v85_v16 = vstv %s69_s17  ;;  %v100_v17 = vstv %s165_s18  ;;  %v112_v18 = vmul.f32 %v111_v14, %v79_v1  ;;  %v126_v19 = vmul.f32 %v125_v15, %v79_v1  ;;  %s221_s5 = scalar_lea.vmem %s149_s3, 128  ;;  %p226_p2 = scmp.lt.s32.totalorder %s149_s3, %s149_s3 }
  0x31   :  { %v84_v20 = vadd.f32 %v83_v12, %v81_v4  ;;  %v99_v21 = vadd.f32 %v98_v13, %v96_v5  ;;  %v114_v22 = vstv %s166_s21  ;;  %v128_v23 = vstv %s167_s22  ;;  %p222_p1 = scmp.ne.s32.totalorder %s149_s3, %s221_s5  ;;  %p227_p3 = scmp.lt.s32.totalorder %s221_s5, %s221_s5 }
  0x32   :  { %v113_v24 = vadd.f32 %v112_v18, %v110_v10  ;;  %v127_v25 = vadd.f32 %v126_v19, %v124_v11  ;;  %v91_v38 = vstv %s73_s0  ;;  %v106_v42 = vstv %s168_s1 }
  0x33   :  { %v86_v26 = vadd.f32 %v85_v16, %v84_v20  ;;  %v101_v27 = vadd.f32 %v100_v17, %v99_v21  ;;  %v120_v46 = vstv %s169_s25  ;;  %v134_v52 = vstv %s170_s26  ;;  %p228_p4 = por %p227_p3, %p226_p2 }
  0x34   :  { %v115_v28 = vadd.f32 %v114_v22, %v113_v24  ;;  %v129_v29 = vadd.f32 %v128_v23, %v127_v25 }
  0x35   :  { %v87_v30 = vmul.f32 0.5, %v86_v26  ;;  %v102_v31 = vmul.f32 0.5, %v101_v27  ;;  %p229_p5 = pnand %p228_p4, %p222_p1 }
  0x36   :  { %v116_v32 = vmul.f32 0.5, %v115_v28  ;;  %v130_v33 = vmul.f32 0.5, %v129_v29 }
  0x37   :  { %175 = vtanh.f32 %v87_v30 }
  0x38   :  { %177 = vtanh.f32 %v102_v31 }
  0x39   :  { %179 = vtanh.f32 %v116_v32 }
  0x3a   :  { %181 = vtanh.f32 %v130_v33 }
  0x41   :  { %v176_v34 = vpop.eup %175 }
  0x42   :  { %v178_v35 = vpop.eup %177  ;;  %v89_v36 = vmul.f32 0.5, %v176_v34 }
  0x43   :  { %v180_v37 = vpop.eup %179  ;;  %v104_v39 = vmul.f32 0.5, %v178_v35 }
  0x44   :  { %v182_v40 = vpop.eup %181  ;;  %v90_v41 = vadd.f32 0.5, %v89_v36  ;;  %v118_v43 = vmul.f32 0.5, %v180_v37 }
  0x45   :  { %v105_v45 = vadd.f32 0.5, %v104_v39  ;;  %v132_v47 = vmul.f32 0.5, %v182_v40 }
  0x46   :  { %v92_v48 = vmul.f32 %v91_v38, %v90_v41  ;;  %v119_v49 = vadd.f32 0.5, %v118_v43 }
  0x47   :  { %v107_v50 = vmul.f32 %v106_v42, %v105_v45  ;;  %v133_v51 = vadd.f32 0.5, %v132_v47 }
  0x48   :  { %v94_v53 = vadd.f32 %v93_v44, %v92_v48  ;;  %v121_v54 = vmul.f32 %v120_v46, %v119_v49 }
  0x49   :  { %v135_v56 = vmul.f32 %v134_v52, %v133_v51 }
  0x4a   :  { %v108_v55 = vadd.f32 %v107_v50, %v94_v53 }
  0x4c   :  { %v122_v57 = vadd.f32 %v121_v54, %v108_v55 }
  0x4e   :  { %v136_v58 = vadd.f32 %v135_v56, %v122_v57 }
  0x50   :  { %v137_v59 = vmul.f32 0.5, %v136_v58 }
  0x52   :  { %183 = vtanh.f32 %v137_v59 }
  0x5c   :  { %v184_v60 = vpop.eup %183 }
  0x5d   :  { %v139_v61 = vmul.f32 0.5, %v184_v60 }
  0x5f   :  { %v140_v62 = vadd.f32 0.5, %v139_v61 }
  0x61   :  { %141 = vst [vmem:[#allocation9] sm:$0xff] %v140_v62 }
  0x62   :  { %232 = shalt.err (!%p229_p5)
}
  0x63   :  { %s233_s7 = scalar_lea.hbm %s324_s6, 128 }
  0x64   :  { %p234_p6 = scmp.ne.s32.totalorder %s324_s6, %s233_s7  ;;  %p237_p7 = scmp.lt.u32.totalorder %s233_s7, %s324_s6 }
  0x66   :  { %p239_p8 = pnand %p237_p7, %p234_p6 }
  0x68   :  { %242 = shalt.err (!%p239_p8)
}
  0x69   :  { %151 = dma.vmem_to_hbm [thread:$0]  %s149_s3, 128, %s324_s6, [#allocation4]  }
  0x6a   :  { %247 = dma.done.wait [#allocation4], 128  }
  0x6b   :  { %248 = vsyncadd [#allocation4], 4294967168 }
  0x6c   :  { %155 = vsyncpa [#allocation4], 1 }
  0x6d   :  { %156 = vsyncpa [#allocation5], 1 }
  0x6e   :  { %157 = vsyncpa [#allocation7], 1 }

</bundles_post_ra>
